<compile_context>
chip_gen: v5e
topology: v5e:2x2
jax: 0.10.0
libtpu: 0.0.40
codegen_flags: <defaults>
</compile_context>

<pallas_src>
import functools

import numpy as np
import jax
import jax.numpy as jnp
from jax.experimental import pallas as pl
from jax.experimental.pallas import tpu as pltpu


SPEC = {
    "activation": "relu",
    "x_dim": 16,
    "other_dim": 16,
    "x_layers": [32, 32],
    "other_layers": [32],
    "hidden_layers": [64, 32],
    "out_dim": 8,
}


def _round_up(n, m):
    return ((n + m - 1) // m) * m


def _activation(name, v):
    if name == "relu":
        return jnp.maximum(v, 0.0)
    if name == "leaky_relu":
        return jnp.where(v >= 0.0, v, 0.01 * v)
    if name == "elu":
        return jnp.where(v >= 0.0, v, jnp.expm1(v))
    raise ValueError(f"unknown activation: {name}")


# -----------------------------------------------------------------------------
# Original (PyTorch-layout) parameters: per layer (W (in,out), b (out,)) in f32.
# -----------------------------------------------------------------------------
def _ff_section_dims(in_dim, layer_list):
    if not layer_list:
        return [], in_dim
    dims = [(in_dim, layer_list[0])] + list(zip(layer_list[:-1], layer_list[1:]))
    return dims, layer_list[-1]


def init_orig_params(spec, key):
    def section(dims, key):
        layers = []
        for din, dout in dims:
            key, kw, kb = jax.random.split(key, 3)
            bound = 1.0 / float(np.sqrt(din))      # PyTorch nn.Linear default range
            W = jax.random.uniform(kw, (din, dout), jnp.float32, -bound, bound)
            b = jax.random.uniform(kb, (dout,), jnp.float32, -bound, bound)
            layers.append((W, b))
        return layers, key

    x_dims, x_repr = _ff_section_dims(spec["x_dim"], spec["x_layers"])
    o_dims, o_repr = _ff_section_dims(spec["other_dim"], spec["other_layers"])
    h_dims, h_repr = _ff_section_dims(x_repr + o_repr, spec["hidden_layers"])
    x_ps, key = section(x_dims, key)
    o_ps, key = section(o_dims, key)
    h_ps, key = section(h_dims, key)
    out_ps, key = section([(h_repr, spec["out_dim"])], key)
    return {"x": x_ps, "other": o_ps, "hidden": h_ps, "out": out_ps[0]}


# -----------------------------------------------------------------------------
# Init-time restructuring: fuse the two branches + concat into one sequential
# chain of zero-padded (dp x dp) layers, packed into two slabs, plus a static
# per-layer activation plan.
#   plan entries: ("act", 0)        -> activate all lanes (dead lanes are 0 and
#                                      act(0)==0, so activating them is exact)
#                 ("linear", 0)     -> no activation (output layer)
#                 ("act_lo", s)     -> activate lanes [0, s)   (other branch is
#                                      identity-carried on lanes >= s)
#                 ("act_hi", s)     -> activate lanes [s, dp)  (x branch is
#                                      identity-carried on lanes <  s)
# The identity-carried lanes are never re-activated, so this is exact for any
# activation (no relu-idempotence assumption).
# -----------------------------------------------------------------------------
def _padded_width(spec):
    widths = [spec["x_dim"] + spec["other_dim"]]
    wx, wo = spec["x_dim"], spec["other_dim"]
    for t in range(max(len(spec["x_layers"]), len(spec["other_layers"]))):
        wx = spec["x_layers"][t] if t < len(spec["x_layers"]) else wx
        wo = spec["other_layers"][t] if t < len(spec["other_layers"]) else wo
        widths.append(wx + wo)
    widths += list(spec["hidden_layers"]) + [spec["out_dim"]]
    return _round_up(max(widths), 128)


def pack_params(spec, params):
    """Returns dict with w_slab (L*dp, dp) bf16, b_slab (L, dp) f32, plan, dp."""
    dp = _padded_width(spec)
    x_ps, o_ps, h_ps = params["x"], params["other"], params["hidden"]
    w_out, b_out = params["out"]

    Ws, bs, plan = [], [], []

    def new_layer():
        return np.zeros((dp, dp), np.float32), np.zeros((dp,), np.float32)

    # Branch "stages": block-diagonal over [x-part | other-part].
    wx, wo = spec["x_dim"], spec["other_dim"]
    for t in range(max(len(x_ps), len(o_ps))):
        W, b = new_layer()
        x_active = t < len(x_ps)
        o_active = t < len(o_ps)
        if x_active:
            Wx, bx = x_ps[t]
            nwx = Wx.shape[1]
            W[0:wx, 0:nwx] = np.asarray(Wx)
            b[0:nwx] = np.asarray(bx)
        else:
            nwx = wx
            W[0:wx, 0:wx] = np.eye(wx, dtype=np.float32)
        if o_active:
            Wo, bo = o_ps[t]
            nwo = Wo.shape[1]
            W[wx:wx + wo, nwx:nwx + nwo] = np.asarray(Wo)
            b[nwx:nwx + nwo] = np.asarray(bo)
        else:
            nwo = wo
            W[wx:wx + wo, nwx:nwx + nwo] = np.eye(wo, dtype=np.float32)
        if x_active and o_active:
            plan.append(("act", 0))
        elif x_active:                       # other branch identity-carried
            plan.append(("act_lo", nwx))
        else:                                # x branch identity-carried
            plan.append(("act_hi", nwx))
        wx, wo = nwx, nwo
        Ws.append(W)
        bs.append(b)

    width = wx + wo                          # carry == concat(x_repr, other_repr)
    for Wh, bh in h_ps:
        W, b = new_layer()
        din, dout = Wh.shape
        assert din == width
        W[0:din, 0:dout] = np.asarray(Wh)
        b[0:dout] = np.asarray(bh)
        width = dout
        Ws.append(W)
        bs.append(b)
        plan.append(("act", 0))

    W, b = new_layer()                       # output layer: no activation
    din, dout = np.asarray(w_out).shape
    assert din == width
    W[0:din, 0:dout] = np.asarray(w_out)
    b[0:dout] = np.asarray(b_out)
    Ws.append(W)
    bs.append(b)
    plan.append(("linear", 0))

    w_slab = jnp.asarray(np.concatenate(Ws, axis=0), jnp.bfloat16)   # (L*dp, dp)
    b_slab = jnp.asarray(np.stack(bs, axis=0), jnp.float32)          # (L, dp)
    return {"w": w_slab, "b": b_slab, "plan": tuple(plan), "dp": dp,
            "n_layers": len(Ws)}


# -----------------------------------------------------------------------------
# Pallas kernel: one batch tile through the whole fused MLP chain.
# -----------------------------------------------------------------------------
def _mlp_kernel(x_ref, w_ref, b_ref, o_ref, *, layer_plan, din0, out_dim, dp, act):
    n_layers = len(layer_plan)
    h = x_ref[...].astype(jnp.bfloat16)               # bf16 carry for the MXU
    for i, (kind, split) in enumerate(layer_plan):
        din = din0 if i == 0 else dp
        w = w_ref[i * dp: i * dp + din, :]            # (din, dp) bf16, static slice
        b = b_ref[i:i + 1, :]                         # (1, dp) f32
        pre = jnp.dot(h, w, preferred_element_type=jnp.float32) + b
        if kind == "act":
            a = _activation(act, pre)
        elif kind == "linear":
            a = pre
        else:
            # Single mixed stage: one branch is identity-carried and must NOT
            # be re-activated. Lanes beyond both branches are exact zeros, so
            # a simple lane-threshold mask (iota compare, no loaded mask) is
            # exact for any activation.
            lane = jax.lax.broadcasted_iota(jnp.int32, pre.shape, 1)
            m = lane < split if kind == "act_lo" else lane >= split
            a = jnp.where(m, _activation(act, pre), pre)
        # bf16 inter-layer carry (the next dot casts to bf16 anyway); keep the
        # final layer's result in f32 for the output store.
        h = a.astype(jnp.bfloat16) if i + 1 < n_layers else a
    o_ref[...] = h[:, :out_dim]


def double_input_forward(x, packed, spec, *, tile_b_max=2048, core_parallel=None):
    """x: (B, x_dim + other_dim). bf16 input recommended (halves input HBM)."""
    w_slab, b_slab = packed["w"], packed["b"]
    plan, dp = packed["plan"], packed["dp"]
    n_layers = len(plan)
    B, din0 = x.shape
    out_dim = spec["out_dim"]

    # v7x has 2 TensorCores per chip; only CORE_PARALLEL actually splits the
    # grid across them. Single-TC chips (v5e/v6e) keep plain "parallel".
    if core_parallel is None:
        kind = jax.devices()[0].device_kind.lower()
        core_parallel = ("v7" in kind) and hasattr(pltpu, "CORE_PARALLEL")

    # Adaptive batch tiling: large tiles amortize the ~0.35us/grid-step
    # overhead; the tile is chosen to divide the (minimally) padded batch so we
    # never pad by anywhere near a full tile. sublane multiple follows dtype.
    sublane = 8 * max(1, 4 // x.dtype.itemsize)       # 8 for f32, 16 for bf16
    b_sub = _round_up(B, sublane)
    n_tiles = max(1, pl.cdiv(b_sub, tile_b_max))
    if core_parallel:
        n_tiles = max(2, n_tiles)
        n_tiles += n_tiles % 2                        # even #tiles -> both TCs busy
    tile_b = _round_up(pl.cdiv(b_sub, n_tiles), sublane)
    b_pad = tile_b * n_tiles
    if b_pad != B:
        # Only a handful of rows (<= ~sublane per tile), never a full tile.
        x = jnp.pad(x, ((0, b_pad - B), (0, 0)))

    kernel = functools.partial(_mlp_kernel, layer_plan=plan, din0=din0,
                               out_dim=out_dim, dp=dp, act=spec["activation"])

    flops = 2 * b_pad * (din0 * dp + (n_layers - 1) * dp * dp)
    transcendentals = b_pad * dp * n_layers if spec["activation"] == "elu" else 0
    bytes_accessed = (x.size * x.dtype.itemsize
                      + b_pad * out_dim * 4
                      + w_slab.size * w_slab.dtype.itemsize
                      + b_slab.size * 4)
    ce = pl.CostEstimate(flops=flops, transcendentals=transcendentals,
                         bytes_accessed=bytes_accessed)

    def run(semantics):
        return pl.pallas_call(
            kernel,
            out_shape=jax.ShapeDtypeStruct((b_pad, out_dim), jnp.float32),
            grid=(n_tiles,),
            in_specs=[
                pl.BlockSpec((tile_b, din0), lambda i: (i, 0)),   # streamed over batch
                pl.BlockSpec(w_slab.shape, lambda i: (0, 0)),     # constant index map:
                pl.BlockSpec(b_slab.shape, lambda i: (0, 0)),     #   VMEM resident
            ],
            out_specs=pl.BlockSpec((tile_b, out_dim), lambda i: (i, 0)),
            compiler_params=pltpu.CompilerParams(dimension_semantics=semantics),
            cost_estimate=ce,
        )(x, w_slab, b_slab)

    if core_parallel:
        try:
            out = run((pltpu.CORE_PARALLEL,))
        except Exception:
            # Target rejected CORE_PARALLEL for this grid: fall back gracefully.
            out = run(("parallel",))
    else:
        out = run(("parallel",))
    return out[:B]


# -----------------------------------------------------------------------------
# Pure-JAX references.
# -----------------------------------------------------------------------------
def reference_forward_f32(x, params, spec):
    """Mirrors the PyTorch forward exactly, full f32."""
    act = spec["activation"]
    xr = x[:, : spec["x_dim"]]
    orr = x[:, spec["x_dim"]:]
    for W, b in params["x"]:
        xr = _activation(act, xr @ W + b)
    for W, b in params["other"]:
        orr = _activation(act, orr @ W + b)
    h = jnp.concatenate([xr, orr], axis=1)
    for W, b in params["hidden"]:
        h = _activation(act, h @ W + b)
    W, b = params["out"]
    return h @ W + b


def reference_forward_mixed(x, params, spec):
    """Same structure, with the kernel's precision policy:
    bf16 matmul inputs, f32 accumulation / bias / activation."""
    act = spec["activation"]

    def lin(a, W, b):
        return jnp.dot(a.astype(jnp.bfloat16), W.astype(jnp.bfloat16),
                       preferred_element_type=jnp.float32) + b

    xr = x[:, : spec["x_dim"]]
    orr = x[:, spec["x_dim"]:]
    for W, b in params["x"]:
        xr = _activation(act, lin(xr, W, b))
    for W, b in params["other"]:
        orr = _activation(act, lin(orr, W, b))
    h = jnp.concatenate([xr, orr], axis=1)
    for W, b in params["hidden"]:
        h = _activation(act, lin(h, W, b))
    W, b = params["out"]
    return lin(h, W, b)


# -----------------------------------------------------------------------------
if __name__ == "__main__":
    key = jax.random.PRNGKey(0)
    key, kx, kp = jax.random.split(key, 3)

    in_dim = SPEC["x_dim"] + SPEC["other_dim"]
    params = init_orig_params(SPEC, kp)
    packed = pack_params(SPEC, params)

    # Two small batches: one that tiles exactly and one that exercises the
    # adaptive (few-row) padding path. Inputs are passed in bf16 per the
    # caller contract (halves input HBM traffic).
    for B in (64, 37):
        kx, k = jax.random.split(kx)
        x_f32 = jax.random.normal(k, (B, in_dim), jnp.float32)
        x_bf16 = x_f32.astype(jnp.bfloat16)

        out = double_input_forward(x_bf16, packed, SPEC, tile_b_max=2048)
        out = jax.block_until_ready(out)
        assert out.shape == (B, SPEC["out_dim"])

        ref_mixed = reference_forward_mixed(x_bf16, params, SPEC)   # same precision policy
        ref_f32 = reference_forward_f32(x_bf16.astype(jnp.float32), params, SPEC)
        assert jnp.allclose(out, ref_mixed, atol=1e-4, rtol=1e-4), \
            f"mismatch vs mixed-precision ref (B={B})"
        assert jnp.allclose(out, ref_f32, atol=3e-2, rtol=3e-2), \
            f"mismatch vs f32 ref (B={B})"

    print("KERNEL_OK")
</pallas_src>

<mosaic_0001>
module attributes {stable_mosaic.version = 11 : i64} {
  func.func @_mlp_kernel(%arg0: i32, %arg1: memref<64x32xbf16, #tpu.memory_space<vmem>>, %arg2: memref<640x128xbf16, #tpu.memory_space<vmem>>, %arg3: memref<5x128xf32, #tpu.memory_space<vmem>>, %arg4: memref<64x8xf32, #tpu.memory_space<vmem>>) attributes {dimension_semantics = [#tpu.dimension_semantics<parallel>], iteration_bounds = array<i64: 1>, scalar_prefetch = 0 : i64, scratch_operands = 0 : i64, tpu.core_type = #tpu.core_type<tc>, window_params = [{transform_indices = @transform_0, window_bounds = array<i64: 64, 32>}, {pipeline_mode = #tpu.pipeline_mode<synchronous>, transform_indices = @transform_1, window_bounds = array<i64: 640, 128>}, {pipeline_mode = #tpu.pipeline_mode<synchronous>, transform_indices = @transform_2, window_bounds = array<i64: 5, 128>}, {transform_indices = @transform_3, window_bounds = array<i64: 64, 8>}]} {
    %c0 = arith.constant 0 : index
    %c0_0 = arith.constant 0 : index
    %0 = vector.load %arg1[%c0, %c0_0] : memref<64x32xbf16, #tpu.memory_space<vmem>>, vector<64x32xbf16>
    %c0_1 = arith.constant 0 : index
    %c0_2 = arith.constant 0 : index
    %1 = vector.load %arg2[%c0_1, %c0_2] : memref<640x128xbf16, #tpu.memory_space<vmem>>, vector<32x128xbf16>
    %c0_3 = arith.constant 0 : index
    %c0_4 = arith.constant 0 : index
    %2 = vector.load %arg3[%c0_3, %c0_4] : memref<5x128xf32, #tpu.memory_space<vmem>>, vector<1x128xf32>
    %cst = arith.constant dense<0.000000e+00> : vector<64x128xf32>
    %3 = tpu.matmul %0, %1, %cst {dimension_numbers = #tpu.dot_dimension_numbers<[1], [0], [0], [1], [0, 0, 1, 1], [], []>} : vector<64x32xbf16>, vector<32x128xbf16>, vector<64x128xf32> -> vector<64x128xf32>
    %4 = vector.broadcast %2 : vector<1x128xf32> to vector<64x128xf32>
    %5 = arith.addf %3, %4 : vector<64x128xf32>
    %cst_5 = arith.constant 0.000000e+00 : f32
    %6 = vector.broadcast %cst_5 : f32 to vector<64x128xf32>
    %7 = arith.maximumf %5, %6 : vector<64x128xf32>
    %8 = arith.truncf %7 : vector<64x128xf32> to vector<64x128xbf16>
    %c128 = arith.constant 128 : index
    %c0_6 = arith.constant 0 : index
    %9 = vector.load %arg2[%c128, %c0_6] : memref<640x128xbf16, #tpu.memory_space<vmem>>, vector<128x128xbf16>
    %c1 = arith.constant 1 : index
    %c0_7 = arith.constant 0 : index
    %10 = vector.load %arg3[%c1, %c0_7] : memref<5x128xf32, #tpu.memory_space<vmem>>, vector<1x128xf32>
    %cst_8 = arith.constant dense<0.000000e+00> : vector<64x128xf32>
    %11 = tpu.matmul %8, %9, %cst_8 {dimension_numbers = #tpu.dot_dimension_numbers<[1], [0], [0], [1], [0, 0, 1, 1], [], []>} : vector<64x128xbf16>, vector<128x128xbf16>, vector<64x128xf32> -> vector<64x128xf32>
    %12 = vector.broadcast %10 : vector<1x128xf32> to vector<64x128xf32>
    %13 = arith.addf %11, %12 : vector<64x128xf32>
    %14 = tpu.iota {dimensions = array<i32: 1>} : vector<64x128xi32>
    %c32_i32 = arith.constant 32 : i32
    %15 = vector.broadcast %c32_i32 : i32 to vector<64x128xi32>
    %16 = arith.cmpi slt, %14, %15 : vector<64x128xi32>
    %cst_9 = arith.constant 0.000000e+00 : f32
    %17 = vector.broadcast %cst_9 : f32 to vector<64x128xf32>
    %18 = arith.maximumf %13, %17 : vector<64x128xf32>
    %19 = arith.select %16, %18, %13 : vector<64x128xi1>, vector<64x128xf32>
    %20 = arith.truncf %19 : vector<64x128xf32> to vector<64x128xbf16>
    %c256 = arith.constant 256 : index
    %c0_10 = arith.constant 0 : index
    %21 = vector.load %arg2[%c256, %c0_10] : memref<640x128xbf16, #tpu.memory_space<vmem>>, vector<128x128xbf16>
    %c2 = arith.constant 2 : index
    %c0_11 = arith.constant 0 : index
    %22 = vector.load %arg3[%c2, %c0_11] : memref<5x128xf32, #tpu.memory_space<vmem>>, vector<1x128xf32>
    %cst_12 = arith.constant dense<0.000000e+00> : vector<64x128xf32>
    %23 = tpu.matmul %20, %21, %cst_12 {dimension_numbers = #tpu.dot_dimension_numbers<[1], [0], [0], [1], [0, 0, 1, 1], [], []>} : vector<64x128xbf16>, vector<128x128xbf16>, vector<64x128xf32> -> vector<64x128xf32>
    %24 = vector.broadcast %22 : vector<1x128xf32> to vector<64x128xf32>
    %25 = arith.addf %23, %24 : vector<64x128xf32>
    %cst_13 = arith.constant 0.000000e+00 : f32
    %26 = vector.broadcast %cst_13 : f32 to vector<64x128xf32>
    %27 = arith.maximumf %25, %26 : vector<64x128xf32>
    %28 = arith.truncf %27 : vector<64x128xf32> to vector<64x128xbf16>
    %c384 = arith.constant 384 : index
    %c0_14 = arith.constant 0 : index
    %29 = vector.load %arg2[%c384, %c0_14] : memref<640x128xbf16, #tpu.memory_space<vmem>>, vector<128x128xbf16>
    %c3 = arith.constant 3 : index
    %c0_15 = arith.constant 0 : index
    %30 = vector.load %arg3[%c3, %c0_15] : memref<5x128xf32, #tpu.memory_space<vmem>>, vector<1x128xf32>
    %cst_16 = arith.constant dense<0.000000e+00> : vector<64x128xf32>
    %31 = tpu.matmul %28, %29, %cst_16 {dimension_numbers = #tpu.dot_dimension_numbers<[1], [0], [0], [1], [0, 0, 1, 1], [], []>} : vector<64x128xbf16>, vector<128x128xbf16>, vector<64x128xf32> -> vector<64x128xf32>
    %32 = vector.broadcast %30 : vector<1x128xf32> to vector<64x128xf32>
    %33 = arith.addf %31, %32 : vector<64x128xf32>
    %cst_17 = arith.constant 0.000000e+00 : f32
    %34 = vector.broadcast %cst_17 : f32 to vector<64x128xf32>
    %35 = arith.maximumf %33, %34 : vector<64x128xf32>
    %36 = arith.truncf %35 : vector<64x128xf32> to vector<64x128xbf16>
    %c512 = arith.constant 512 : index
    %c0_18 = arith.constant 0 : index
    %37 = vector.load %arg2[%c512, %c0_18] : memref<640x128xbf16, #tpu.memory_space<vmem>>, vector<128x128xbf16>
    %c4 = arith.constant 4 : index
    %c0_19 = arith.constant 0 : index
    %38 = vector.load %arg3[%c4, %c0_19] : memref<5x128xf32, #tpu.memory_space<vmem>>, vector<1x128xf32>
    %cst_20 = arith.constant dense<0.000000e+00> : vector<64x128xf32>
    %39 = tpu.matmul %36, %37, %cst_20 {dimension_numbers = #tpu.dot_dimension_numbers<[1], [0], [0], [1], [0, 0, 1, 1], [], []>} : vector<64x128xbf16>, vector<128x128xbf16>, vector<64x128xf32> -> vector<64x128xf32>
    %40 = vector.broadcast %38 : vector<1x128xf32> to vector<64x128xf32>
    %41 = arith.addf %39, %40 : vector<64x128xf32>
    %42 = vector.extract_strided_slice %41 {offsets = [0, 0], sizes = [64, 8], strides = [1, 1]} : vector<64x128xf32> to vector<64x8xf32>
    %c0_21 = arith.constant 0 : index
    %c0_22 = arith.constant 0 : index
    %43 = vector.load %arg4[%c0_21, %c0_22] : memref<64x8xf32, #tpu.memory_space<vmem>>, vector<64x8xf32>
    tpu.vector_store %arg4[%c0_21, %c0_22], %42 {strides = array<i32>} : memref<64x8xf32, #tpu.memory_space<vmem>>, vector<64x8xf32>,
    return
  }
  func.func @transform_0(%arg0: i32) -> (i32, i32) {
    %c0_i32 = arith.constant 0 : i32
    %c0_i32_0 = arith.constant 0 : i32
    return %arg0, %c0_i32 : i32, i32
  }
  func.func @transform_1(%arg0: i32) -> (i32, i32) {
    %c0_i32 = arith.constant 0 : i32
    %c0_i32_0 = arith.constant 0 : i32
    %c0_i32_1 = arith.constant 0 : i32
    return %c0_i32, %c0_i32_0 : i32, i32
  }
  func.func @transform_2(%arg0: i32) -> (i32, i32) {
    %c0_i32 = arith.constant 0 : i32
    %c0_i32_0 = arith.constant 0 : i32
    %c0_i32_1 = arith.constant 0 : i32
    return %c0_i32, %c0_i32_0 : i32, i32
  }
  func.func @transform_3(%arg0: i32) -> (i32, i32) {
    %c0_i32 = arith.constant 0 : i32
    %c0_i32_0 = arith.constant 0 : i32
    return %arg0, %c0_i32 : i32, i32
  }
}

</mosaic_0001>

<bundles_post_ra>
// kernel: tpu_custom_call.1
= control target key start
LH: loop header
LB: loop body
LE: loop exit
PB: predicated region body
PF: predicated region fallthrough
CT: control target
= control target key end

     0   :  { %8 = vsyncpa [#allocation3], 0  ;;  %s802_s15 = smov [#allocation2]   ;;  %s803_s17 = smov 64   ;;  %s899_s0 = inlined_call_operand.vmem [shape: bf16[64,32], index: 0, kind: input, shape index: {}]   ;;  %s900_s1 = inlined_call_operand.hbm [shape: bf16[640,128], index: 1, kind: input, shape index: {}]   ;;  %s901_s2 = inlined_call_operand.vmem [shape: f32[5,128], index: 2, kind: input, shape index: {}]   ;;  %s902_s3 = inlined_call_operand.vmem [shape: f32[64,8], index: 3, kind: output, shape index: {}]  }
   0x1   :  { %s15_s14 = sshll.u32 %s900_s1, 4  ;;  %s17_s16 = sshll.u32 %s802_s15, 4  ;;  %s16_s14 = int_to_ptr.hbm [resolvable:$true] %s15_s14  ;;  %s18_s16 = int_to_ptr.vmem [resolvable:$true] %s17_s16 }
   0x2   :  { %s804_s18 = smov 4  }
   0x3   :  { %23 = dma.hbm_to_vmem [thread:$0]  %s16_s14, 5120, %s18_s16, [#allocation3], %s803_s17, %s803_s17, %s804_s18  }
   0x4   :  { %800 = dma.done.wait [#allocation3], 5120  }
   0x5   :  { %801 = vsyncadd [#allocation3], 4294962176  ;;  %v733_v0 = vld [vmem:[#allocation2 + $0x8] sm:$0xff]  ;;  %v732_v1 = vld [vmem:[#allocation2] sm:$0xff]  ;;  %vm77_vm0 = vcmask 261120   ;;  %v226_v53 = vlaneseq  ;;  %vm558_vm2 = vcmask 64512  }
   0x6   :  { %96 = vmatpush.bf16.msra.mxu0 %v733_v0  ;;  %766 = vmatpush.bf16.msra.mxu1 %v733_v0  ;;  %v741_v2 = vld [vmem:[#allocation2 + $0x78] sm:$0xff]  ;;  %v728_v3 = vld [vmem:[%s899_s0] sm:$0xff]  ;;  %v730_v4 = vld [vmem:[%s899_s0 + $0x10] sm:$0xff] }
   0x7   :  { %v740_v5 = vld [vmem:[#allocation2 + $0x70] sm:$0xff]  ;;  %v739_v6 = vld [vmem:[#allocation2 + $0x68] sm:$0xff]  ;;  %v738_v7 = vld [vmem:[#allocation2 + $0x60] sm:$0xff]  ;;  %v227_v55 = vand.u32 127, %v226_v53 }
   0x8   :  { %v737_v8 = vld [vmem:[#allocation2 + $0x58] sm:$0xff]  ;;  %v729_v9 = vld [vmem:[%s899_s0 + $0x8] sm:$0xff]  ;;  %v736_v11 = vld [vmem:[#allocation2 + $0x50] sm:$0xff] }
   0x9   :  { %v731_v10 = vld [vmem:[%s899_s0 + $0x18] sm:$0xff]  ;;  %v735_v12 = vld [vmem:[#allocation2 + $0x48] sm:$0xff]  ;;  %v734_v13 = vld [vmem:[#allocation2 + $0x40] sm:$0xff]  ;;  %vm228_vm1 = vcmp.lt.s32.totalorder %v227_v55, 32 }
   0xa   :  { %97 = vmatpush.bf16.msra.mxu0 %v732_v1  ;;  %767 = vmatpush.bf16.msra.mxu1 %v732_v1  ;;  %v771_v15 = vld [vmem:[%s901_s2] ss:$0 sm:$0xff]  ;;  %v749_v31 = vld [vmem:[#allocation2 + $0xb8] sm:$0xff]  ;;  %v748_v32 = vld [vmem:[#allocation2 + $0xb0] sm:$0xff] }
   0xb   :  { %315 = vmatpush.bf16.msra.mxu2 %v749_v31  ;;  %v747_v35 = vld [vmem:[#allocation2 + $0xa8] sm:$0xff]  ;;  %v746_v39 = vld [vmem:[#allocation2 + $0xa0] sm:$0xff]  ;;  %v745_v47 = vld [vmem:[#allocation2 + $0x98] sm:$0xff] }
   0xc   :  { %v744_v48 = vld [vmem:[#allocation2 + $0x90] sm:$0xff]  ;;  %v743_v49 = vld [vmem:[#allocation2 + $0x88] sm:$0xff]  ;;  %v742_v50 = vld [vmem:[#allocation2 + $0x80] sm:$0xff] }
   0xd   :  { %596 = vmatmul.msk.bf16.vlgmr.msra.gmra.mxu0 %vm77_vm0, %v728_v3  ;;  %598 = vmatmul.msk.bf16.vlgmr.msra.gmra.mxu1 %vm77_vm0, %v730_v4  ;;  %v772_v52 = vld [vmem:[%s901_s2 + $0x1] ss:$0 sm:$0xff]  ;;  %v752_v31 = vld [vmem:[#allocation2 + $0xd0] sm:$0xff] }
   0xe   :  { %197 = vmatpush.bf16.msrb.mxu1 %v741_v2 }
   0xf   :  { %316 = vmatpush.bf16.msra.mxu2 %v748_v32  ;;  %v751_v32 = vld [vmem:[#allocation2 + $0xc8] sm:$0xff] }
  0x12   :  { %198 = vmatpush.bf16.msrb.mxu1 %v740_v5 }
  0x13   :  { %317 = vmatpush.bf16.msra.mxu2 %v747_v35  ;;  %v773_v35 = vld [vmem:[%s901_s2 + $0x2] ss:$0 sm:$0xff] }
  0x16   :  { %199 = vmatpush.bf16.msrb.mxu1 %v739_v6 }
  0x17   :  { %318 = vmatpush.bf16.msra.mxu2 %v746_v39 }
  0x1a   :  { %200 = vmatpush.bf16.msrb.mxu1 %v738_v7 }
  0x1b   :  { %319 = vmatpush.bf16.msra.mxu2 %v745_v47 }
  0x1d   :  { %597 = vmatmul.msk.bf16.gmra.mxu0 %vm77_vm0, %v729_v9  ;;  %599 = vmatmul.msk.bf16.gmra.mxu1 %vm77_vm0, %v731_v10  ;;  %v757_v9 = vld [vmem:[#allocation2 + $0xf8] sm:$0xff]  ;;  %v756_v10 = vld [vmem:[#allocation2 + $0xf0] sm:$0xff] }
  0x1e   :  { %201 = vmatpush.bf16.msrb.mxu1 %v737_v8  ;;  %422 = vmatpush.bf16.msra.mxu3 %v757_v9 }
  0x1f   :  { %320 = vmatpush.bf16.msra.mxu2 %v744_v48 }
  0x22   :  { %202 = vmatpush.bf16.msrb.mxu1 %v736_v11  ;;  %423 = vmatpush.bf16.msra.mxu3 %v756_v10 }
  0x23   :  { %321 = vmatpush.bf16.msra.mxu2 %v743_v49  ;;  %v765_v49 = vld [vmem:[#allocation2 + $0x138] sm:$0xff] }
  0x24   :  { %529 = vmatpush.bf16.msrb.mxu0 %v765_v49 }
  0x26   :  { %203 = vmatpush.bf16.msrb.mxu1 %v735_v12  ;;  %v755_v12 = vld [vmem:[#allocation2 + $0xe8] sm:$0xff] }
  0x27   :  { %322 = vmatpush.bf16.msra.mxu2 %v742_v50  ;;  %424 = vmatpush.bf16.msra.mxu3 %v755_v12 }
  0x2a   :  { %204 = vmatpush.bf16.msrb.mxu1 %v734_v13 }
  0x8a   :  { %v99_v14 = vpop.f32.mrf.mxu0  ;;  %v109_v23 = vpop.f32.mrf.mxu1 }
  0x8b   :  { %v100_v16 = vadd.f32 %v771_v15, %v99_v14  ;;  %v110_v33 = vadd.f32 %v771_v15, %v109_v23 }
  0x8d   :  { %v119_v19 = vmax.f32 %v100_v16, 0.0  ;;  %v123_v37 = vmax.f32 %v110_v33, 0.0  ;;  %v754_v16 = vld [vmem:[#allocation2 + $0xe0] sm:$0xff] }
  0x8e   :  { %425 = vmatpush.bf16.msra.mxu3 %v754_v16  ;;  %v750_v33 = vld [vmem:[#allocation2 + $0xc0] sm:$0xff] }
  0x92   :  { %v101_v17 = vpop.f32.mrf.mxu0  ;;  %v111_v30 = vpop.f32.mrf.mxu1 }
  0x93   :  { %v102_v18 = vadd.f32 %v771_v15, %v101_v17  ;;  %v112_v34 = vadd.f32 %v771_v15, %v111_v30  ;;  %v753_v30 = vld [vmem:[#allocation2 + $0xd8] sm:$0xff] }
  0x94   :  { %426 = vmatpush.bf16.msra.mxu3 %v753_v30 }
  0x95   :  { %v120_v20 = vmax.f32 %v102_v18, 0.0  ;;  %v124_v38 = vmax.f32 %v112_v34, 0.0 }
  0x97   :  { %v127_v21 = vpack.c.bf16 %v120_v20, %v119_v19  ;;  %v129_v40 = vpack.c.bf16 %v124_v38, %v123_v37 }
  0x98   :  { %427 = vmatpush.bf16.msra.mxu3 %v752_v31 }
  0x99   :  { %205 = vmatmul.bf16.vlgmr.msrb.gmra.mxu1 %v127_v21 }
  0x9a   :  { %v104_v22 = vpop.f32.mrf.mxu0  ;;  %v114_v36 = vpop.f32.mrf.mxu1 }
  0x9b   :  { %v105_v24 = vadd.f32 %v771_v15, %v104_v22  ;;  %v115_v42 = vadd.f32 %v771_v15, %v114_v36 }
  0x9c   :  { %428 = vmatpush.bf16.msra.mxu3 %v751_v32 }
  0x9d   :  { %v121_v27 = vmax.f32 %v105_v24, 0.0  ;;  %v125_v44 = vmax.f32 %v115_v42, 0.0 }
  0xa0   :  { %429 = vmatpush.bf16.msra.mxu3 %v750_v33 }
  0xa2   :  { %v106_v25 = vpop.f32.mrf.mxu0  ;;  %v116_v41 = vpop.f32.mrf.mxu1 }
  0xa3   :  { %v107_v26 = vadd.f32 %v771_v15, %v106_v25  ;;  %v117_v43 = vadd.f32 %v771_v15, %v116_v41 }
  0xa5   :  { %v122_v28 = vmax.f32 %v107_v26, 0.0  ;;  %v126_v45 = vmax.f32 %v117_v43, 0.0 }
  0xa7   :  { %v128_v29 = vpack.c.bf16 %v122_v28, %v121_v27  ;;  %v130_v46 = vpack.c.bf16 %v126_v45, %v125_v44 }
  0xa9   :  { %210 = vmatmul.bf16.gmra.mxu1 %v128_v29 }
  0xb9   :  { %215 = vmatmul.bf16.gmra.mxu1 %v129_v40 }
  0xc9   :  { %220 = vmatmul.bf16.gmra.mxu1 %v130_v46 }
 0x116   :  { %v206_v51 = vpop.f32.mrf.mxu1 }
 0x117   :  { %v207_v54 = vadd.f32 %v772_v52, %v206_v51  ;;  %v764_v51 = vld [vmem:[#allocation2 + $0x130] sm:$0xff] }
 0x118   :  { %530 = vmatpush.bf16.msrb.mxu0 %v764_v51 }
 0x119   :  { %v229_v57 = vmax.f32 %v207_v54, 0.0 }
 0x11b   :  { %v237_v60 = vsel %vm228_vm1, %v229_v57, %v207_v54 }
 0x11e   :  { %v208_v56 = vpop.f32.mrf.mxu1 }
 0x11f   :  { %v209_v58 = vadd.f32 %v772_v52, %v208_v56  ;;  %v762_v56 = vld [vmem:[#allocation2 + $0x120] sm:$0xff] }
 0x121   :  { %v230_v59 = vmax.f32 %v209_v58, 0.0 }
 0x123   :  { %v238_v61 = vsel %vm228_vm1, %v230_v59, %v209_v58 }
 0x124   :  { %v245_v62 = vpack.c.bf16 %v238_v61, %v237_v60  ;;  %v761_v60 = vld [vmem:[#allocation2 + $0x118] sm:$0xff] }
 0x126   :  { %v211_v63 = vpop.f32.mrf.mxu1  ;;  %323 = vmatmul.bf16.vlgmr.msra.gmra.mxu2 %v245_v62 }
 0x127   :  { %v212_v0 = vadd.f32 %v772_v52, %v211_v63 }
 0x129   :  { %v231_v2 = vmax.f32 %v212_v0, 0.0 }
 0x12b   :  { %v239_v5 = vsel %vm228_vm1, %v231_v2, %v212_v0 }
 0x12e   :  { %v213_v1 = vpop.f32.mrf.mxu1 }
 0x12f   :  { %v214_v3 = vadd.f32 %v772_v52, %v213_v1 }
 0x131   :  { %v232_v4 = vmax.f32 %v214_v3, 0.0 }
 0x133   :  { %v240_v6 = vsel %vm228_vm1, %v232_v4, %v214_v3  ;;  %v760_v4 = vld [vmem:[#allocation2 + $0x110] sm:$0xff] }
 0x134   :  { %v246_v7 = vpack.c.bf16 %v240_v6, %v239_v5  ;;  %v759_v5 = vld [vmem:[#allocation2 + $0x108] sm:$0xff]  ;;  %v758_v6 = vld [vmem:[#allocation2 + $0x100] sm:$0xff] }
 0x136   :  { %v216_v8 = vpop.f32.mrf.mxu1  ;;  %328 = vmatmul.bf16.gmra.mxu2 %v246_v7 }
 0x137   :  { %v217_v11 = vadd.f32 %v772_v52, %v216_v8  ;;  %v774_v8 = vld [vmem:[%s901_s2 + $0x3] ss:$0 sm:$0xff] }
 0x139   :  { %v233_v14 = vmax.f32 %v217_v11, 0.0 }
 0x13b   :  { %v241_v18 = vsel %vm228_vm1, %v233_v14, %v217_v11 }
 0x13e   :  { %v218_v13 = vpop.f32.mrf.mxu1 }
 0x13f   :  { %v219_v15 = vadd.f32 %v772_v52, %v218_v13 }
 0x141   :  { %v234_v17 = vmax.f32 %v219_v15, 0.0 }
 0x143   :  { %v242_v19 = vsel %vm228_vm1, %v234_v17, %v219_v15 }
 0x144   :  { %v247_v20 = vpack.c.bf16 %v242_v19, %v241_v18 }
 0x146   :  { %v221_v21 = vpop.f32.mrf.mxu1  ;;  %333 = vmatmul.bf16.gmra.mxu2 %v247_v20 }
 0x147   :  { %v222_v22 = vadd.f32 %v772_v52, %v221_v21 }
 0x149   :  { %v235_v24 = vmax.f32 %v222_v22, 0.0 }
 0x14b   :  { %v243_v27 = vsel %vm228_vm1, %v235_v24, %v222_v22 }
 0x14e   :  { %v223_v23 = vpop.f32.mrf.mxu1 }
 0x14f   :  { %v224_v25 = vadd.f32 %v772_v52, %v223_v23  ;;  %v763_v52 = vld [vmem:[#allocation2 + $0x128] sm:$0xff] }
 0x150   :  { %531 = vmatpush.bf16.msrb.mxu0 %v763_v52 }
 0x151   :  { %v236_v26 = vmax.f32 %v224_v25, 0.0 }
 0x153   :  { %v244_v28 = vsel %vm228_vm1, %v236_v26, %v224_v25 }
 0x154   :  { %v248_v29 = vpack.c.bf16 %v244_v28, %v243_v27  ;;  %532 = vmatpush.bf16.msrb.mxu0 %v762_v56 }
 0x156   :  { %338 = vmatmul.bf16.gmra.mxu2 %v248_v29 }
 0x158   :  { %533 = vmatpush.bf16.msrb.mxu0 %v761_v60 }
 0x15c   :  { %534 = vmatpush.bf16.msrb.mxu0 %v760_v4 }
 0x160   :  { %535 = vmatpush.bf16.msrb.mxu0 %v759_v5 }
 0x164   :  { %536 = vmatpush.bf16.msrb.mxu0 %v758_v6 }
 0x1a9   :  { %v324_v34 = vpop.f32.mrf.mxu2 }
 0x1aa   :  { %v325_v36 = vadd.f32 %v773_v35, %v324_v34 }
 0x1ac   :  { %v344_v39 = vmax.f32 %v325_v36, 0.0  ;;  %v775_v36 = vld [vmem:[%s901_s2 + $0x4] ss:$0 sm:$0xff] }
 0x1b1   :  { %v326_v37 = vpop.f32.mrf.mxu2 }
 0x1b2   :  { %v327_v38 = vadd.f32 %v773_v35, %v326_v37 }
 0x1b4   :  { %v345_v40 = vmax.f32 %v327_v38, 0.0 }
 0x1b6   :  { %v352_v41 = vpack.c.bf16 %v345_v40, %v344_v39 }
 0x1b8   :  { %430 = vmatmul.bf16.vlgmr.msra.gmra.mxu3 %v352_v41 }
 0x1b9   :  { %v329_v42 = vpop.f32.mrf.mxu2 }
 0x1ba   :  { %v330_v43 = vadd.f32 %v773_v35, %v329_v42 }
 0x1bc   :  { %v346_v46 = vmax.f32 %v330_v43, 0.0 }
 0x1c1   :  { %v331_v44 = vpop.f32.mrf.mxu2 }
 0x1c2   :  { %v332_v45 = vadd.f32 %v773_v35, %v331_v44 }
 0x1c4   :  { %v347_v47 = vmax.f32 %v332_v45, 0.0 }
 0x1c6   :  { %v353_v48 = vpack.c.bf16 %v347_v47, %v346_v46 }
 0x1c8   :  { %435 = vmatmul.bf16.gmra.mxu3 %v353_v48 }
 0x1c9   :  { %v334_v50 = vpop.f32.mrf.mxu2 }
 0x1ca   :  { %v335_v53 = vadd.f32 %v773_v35, %v334_v50 }
 0x1cc   :  { %v348_v57 = vmax.f32 %v335_v53, 0.0 }
 0x1d1   :  { %v336_v54 = vpop.f32.mrf.mxu2 }
 0x1d2   :  { %v337_v55 = vadd.f32 %v773_v35, %v336_v54 }
 0x1d4   :  { %v349_v58 = vmax.f32 %v337_v55, 0.0 }
 0x1d6   :  { %v354_v59 = vpack.c.bf16 %v349_v58, %v348_v57 }
 0x1d8   :  { %440 = vmatmul.bf16.gmra.mxu3 %v354_v59 }
 0x1d9   :  { %v339_v61 = vpop.f32.mrf.mxu2 }
 0x1da   :  { %v340_v62 = vadd.f32 %v773_v35, %v339_v61 }
 0x1dc   :  { %v350_v1 = vmax.f32 %v340_v62, 0.0 }
 0x1e1   :  { %v341_v63 = vpop.f32.mrf.mxu2 }
 0x1e2   :  { %v342_v0 = vadd.f32 %v773_v35, %v341_v63 }
 0x1e4   :  { %v351_v2 = vmax.f32 %v342_v0, 0.0 }
 0x1e6   :  { %v355_v3 = vpack.c.bf16 %v351_v2, %v350_v1 }
 0x1e8   :  { %445 = vmatmul.bf16.gmra.mxu3 %v355_v3 }
 0x23b   :  { %v431_v7 = vpop.f32.mrf.mxu3 }
 0x23c   :  { %v432_v9 = vadd.f32 %v774_v8, %v431_v7 }
 0x23e   :  { %v451_v12 = vmax.f32 %v432_v9, 0.0 }
 0x243   :  { %v433_v10 = vpop.f32.mrf.mxu3 }
 0x244   :  { %v434_v11 = vadd.f32 %v774_v8, %v433_v10 }
 0x246   :  { %v452_v13 = vmax.f32 %v434_v11, 0.0 }
 0x248   :  { %v459_v14 = vpack.c.bf16 %v452_v13, %v451_v12 }
 0x24a   :  { %537 = vmatmul.bf16.vlgmr.msrb.gmra.mxu0 %v459_v14 }
 0x24b   :  { %v436_v15 = vpop.f32.mrf.mxu3 }
 0x24c   :  { %v437_v16 = vadd.f32 %v774_v8, %v436_v15 }
 0x24e   :  { %v453_v19 = vmax.f32 %v437_v16, 0.0 }
 0x253   :  { %v438_v17 = vpop.f32.mrf.mxu3 }
 0x254   :  { %v439_v18 = vadd.f32 %v774_v8, %v438_v17 }
 0x256   :  { %v454_v20 = vmax.f32 %v439_v18, 0.0 }
 0x258   :  { %v460_v21 = vpack.c.bf16 %v454_v20, %v453_v19 }
 0x25a   :  { %542 = vmatmul.bf16.gmra.mxu0 %v460_v21 }
 0x25b   :  { %v441_v22 = vpop.f32.mrf.mxu3 }
 0x25c   :  { %v442_v23 = vadd.f32 %v774_v8, %v441_v22 }
 0x25e   :  { %v455_v26 = vmax.f32 %v442_v23, 0.0 }
 0x263   :  { %v443_v24 = vpop.f32.mrf.mxu3 }
 0x264   :  { %v444_v25 = vadd.f32 %v774_v8, %v443_v24 }
 0x266   :  { %v456_v27 = vmax.f32 %v444_v25, 0.0 }
 0x268   :  { %v461_v28 = vpack.c.bf16 %v456_v27, %v455_v26 }
 0x26a   :  { %547 = vmatmul.bf16.gmra.mxu0 %v461_v28 }
 0x26b   :  { %v446_v29 = vpop.f32.mrf.mxu3 }
 0x26c   :  { %v447_v30 = vadd.f32 %v774_v8, %v446_v29 }
 0x26e   :  { %v457_v33 = vmax.f32 %v447_v30, 0.0 }
 0x273   :  { %v448_v31 = vpop.f32.mrf.mxu3 }
 0x274   :  { %v449_v32 = vadd.f32 %v774_v8, %v448_v31 }
 0x276   :  { %v458_v34 = vmax.f32 %v449_v32, 0.0 }
 0x278   :  { %v462_v35 = vpack.c.bf16 %v458_v34, %v457_v33 }
 0x27a   :  { %552 = vmatmul.bf16.gmra.mxu0 %v462_v35 }
 0x2c7   :  { %v538_v37 = vpop.f32.mrf.mxu0 }
 0x2c8   :  { %v539_v38 = vadd.f32 %v775_v36, %v538_v37 }
 0x2ca   :  { %559 = vst.msk [vmem:[%s902_s3] sm:$0xff] %vm558_vm2, %v539_v38 }
 0x2cf   :  { %v540_v39 = vpop.f32.mrf.mxu0 }
 0x2d0   :  { %v541_v40 = vadd.f32 %v775_v36, %v540_v39 }
 0x2d2   :  { %560 = vst.msk [vmem:[%s902_s3 + $0x8] sm:$0xff] %vm558_vm2, %v541_v40 }
 0x2d7   :  { %v543_v41 = vpop.f32.mrf.mxu0 }
 0x2d8   :  { %v544_v42 = vadd.f32 %v775_v36, %v543_v41 }
 0x2da   :  { %561 = vst.msk [vmem:[%s902_s3 + $0x10] sm:$0xff] %vm558_vm2, %v544_v42 }
 0x2df   :  { %v545_v43 = vpop.f32.mrf.mxu0 }
 0x2e0   :  { %v546_v44 = vadd.f32 %v775_v36, %v545_v43 }
 0x2e2   :  { %562 = vst.msk [vmem:[%s902_s3 + $0x18] sm:$0xff] %vm558_vm2, %v546_v44 }
 0x2e7   :  { %v548_v45 = vpop.f32.mrf.mxu0 }
 0x2e8   :  { %v549_v46 = vadd.f32 %v775_v36, %v548_v45 }
 0x2ea   :  { %563 = vst.msk [vmem:[%s902_s3 + $0x20] sm:$0xff] %vm558_vm2, %v549_v46 }
 0x2ef   :  { %v550_v47 = vpop.f32.mrf.mxu0 }
 0x2f0   :  { %v551_v48 = vadd.f32 %v775_v36, %v550_v47 }
 0x2f2   :  { %564 = vst.msk [vmem:[%s902_s3 + $0x28] sm:$0xff] %vm558_vm2, %v551_v48 }
 0x2f7   :  { %v553_v49 = vpop.f32.mrf.mxu0 }
 0x2f8   :  { %v554_v50 = vadd.f32 %v775_v36, %v553_v49 }
 0x2fa   :  { %565 = vst.msk [vmem:[%s902_s3 + $0x30] sm:$0xff] %vm558_vm2, %v554_v50 }
 0x2ff   :  { %v555_v51 = vpop.f32.mrf.mxu0 }
 0x300   :  { %v556_v52 = vadd.f32 %v775_v36, %v555_v51 }
 0x302   :  { %566 = vst.msk [vmem:[%s902_s3 + $0x38] sm:$0xff] %vm558_vm2, %v556_v52 }
 0x303   :  { %571 = vsyncpa [#allocation3], 1 }

</bundles_post_ra>
